<compile_context>
chip_gen: v5e
topology: v5e:2x2
jax: 0.10.0
libtpu: 0.0.40
codegen_flags: <defaults>
</compile_context>

<pallas_src>
import jax
import jax.numpy as jnp
from jax.experimental import pallas as pl
from jax.experimental.pallas import tpu as pltpu


# --------------------------------------------------------------------------- #
# Kernels
# --------------------------------------------------------------------------- #
def _merged_qkv_kernel(x_ref, w_ref, bias_ref, out_ref):
    """Inference path: LoRA already merged into W.  One GEMM + bias.

    x_ref:    (TN, D)    activations (any float dtype; cast in-kernel)
    w_ref:    (D, 3D)    merged weight (compute dtype, e.g. bf16)
    bias_ref: (1, 3D)    frozen qkv bias (f32)
    out_ref:  (TN, 3D)
    """
    x = x_ref[...].astype(w_ref.dtype)
    acc = jnp.dot(x, w_ref[...], preferred_element_type=jnp.float32)
    out_ref[...] = (acc + bias_ref[...]).astype(out_ref.dtype)


def _lora_qkv_kernel(x_ref, w_ref, a_ref, bq_ref, bv_ref, bias_ref, out_ref):
    """Training-style path: explicit LoRA, slab-wise to minimize f32 VMEM.

    x_ref:    (TN, D)    activations
    w_ref:    (D, 3D)    frozen qkv weight (compute dtype)
    a_ref:    (D, 2r)    [A_q | A_v]       (compute dtype)
    bq_ref:   (r, D)     B_q               (compute dtype)
    bv_ref:   (r, D)     B_v               (compute dtype)
    bias_ref: (1, 3D)    frozen qkv bias   (f32)
    out_ref:  (TN, 3D)
    """
    dim = x_ref.shape[-1]
    r = bq_ref.shape[0]
    x = x_ref[...].astype(w_ref.dtype)
    bias = bias_ref[...]

    # Tiny LoRA first stage: (TN, 2r), then two small second-stage dots.
    h_lora = jnp.dot(x, a_ref[...], preferred_element_type=jnp.float32)
    dq = jnp.dot(h_lora[:, :r].astype(bq_ref.dtype), bq_ref[...],
                 preferred_element_type=jnp.float32)
    dv = jnp.dot(h_lora[:, r:].astype(bv_ref.dtype), bv_ref[...],
                 preferred_element_type=jnp.float32)

    # Q slab
    q = jnp.dot(x, w_ref[:, :dim], preferred_element_type=jnp.float32)
    out_ref[:, :dim] = (q + bias[:, :dim] + dq).astype(out_ref.dtype)
    # K slab (no LoRA)
    k = jnp.dot(x, w_ref[:, dim:2 * dim], preferred_element_type=jnp.float32)
    out_ref[:, dim:2 * dim] = (k + bias[:, dim:2 * dim]).astype(out_ref.dtype)
    # V slab
    v = jnp.dot(x, w_ref[:, 2 * dim:], preferred_element_type=jnp.float32)
    out_ref[:, 2 * dim:] = (v + bias[:, 2 * dim:] + dv).astype(out_ref.dtype)


# --------------------------------------------------------------------------- #
# Parameter preparation (done ONCE, outside the per-forward hot path)
# --------------------------------------------------------------------------- #
def prepare_lora_qkv_params(w_qkv, b_qkv, a_q, b_q, a_v, b_v, *,
                            merge_lora=True, compute_dtype=jnp.bfloat16):
    """Pre-pack weights for lora_qkv.  Weights already in (in, out) layout:
       w_qkv: (D, 3D), b_qkv: (3D,), a_q/a_v: (D, r), b_q/b_v: (r, D).

    merge_lora=True  -> inference: LoRA folded into W (single-GEMM kernel).
    merge_lora=False -> training-style: explicit LoRA (slab-wise kernel).
    """
    dim = w_qkv.shape[0]
    bias = b_qkv.reshape(1, 3 * dim).astype(jnp.float32)
    if merge_lora:
        w = w_qkv.astype(jnp.float32)
        w = w.at[:, :dim].add(a_q.astype(jnp.float32) @ b_q.astype(jnp.float32))
        w = w.at[:, 2 * dim:].add(a_v.astype(jnp.float32) @ b_v.astype(jnp.float32))
        return {"w": w.astype(compute_dtype), "bias": bias}
    a_cat = jnp.concatenate([a_q, a_v], axis=1).astype(compute_dtype)
    return {"w": w_qkv.astype(compute_dtype), "a": a_cat,
            "b_q": b_q.astype(compute_dtype), "b_v": b_v.astype(compute_dtype),
            "bias": bias}


# --------------------------------------------------------------------------- #
# Wrapper
# --------------------------------------------------------------------------- #
def lora_qkv(x, params, *, tile_n=256, out_dtype=None, vmem_limit_bytes=None,
             x_buffer_count=None):
    """x: (..., D) -> (..., 3D).  params from prepare_lora_qkv_params.

    tile_n: token-tile size (multiple of 8).  Defaults: 256 (v7x/v5e); use 512
            on v6e together with vmem_limit_bytes=64<<20.
    out_dtype: defaults to the compute dtype (bf16) -> halves output HBM bytes.
    x_buffer_count: optional pipeline depth for the x input (e.g. 3) in the
            memory-bound small-dim regime; default None = standard 2.
    """
    orig_shape = x.shape
    dim = orig_shape[-1]
    merged = "a" not in params
    w = params["w"]
    bias = params["bias"]
    if out_dtype is None:
        out_dtype = w.dtype

    x2d = x.reshape(-1, dim)          # no pad, no dtype cast (done in-kernel)
    n = x2d.shape[0]
    grid = (pl.cdiv(n, tile_n),)      # Pallas masks the ragged last tile

    if merged:
        kernel = _merged_qkv_kernel
        weight_args = (w, bias)
        r = 0
    else:
        kernel = _lora_qkv_kernel
        weight_args = (w, params["a"], params["b_q"], params["b_v"], bias)
        r = params["b_q"].shape[0]

    x_spec_kwargs = {}
    if x_buffer_count is not None:
        x_spec_kwargs["pipeline_mode"] = pl.Buffered(x_buffer_count)
    x_spec = pl.BlockSpec((tile_n, dim), lambda i: (i, 0), **x_spec_kwargs)
    in_specs = [x_spec] + [
        pl.BlockSpec(memory_space=pltpu.MemorySpace.VMEM)   # whole-array residents
        for _ in weight_args
    ]

    # Cost estimate (advisory, for XLA scheduling around the custom call).
    w_itemsize = jnp.dtype(w.dtype).itemsize
    out_itemsize = jnp.dtype(out_dtype).itemsize
    flops = 2 * n * dim * 3 * dim
    if not merged:
        flops += 2 * n * dim * 2 * r + 2 * 2 * n * r * dim
    bytes_accessed = (n * dim * x2d.dtype.itemsize
                      + n * 3 * dim * out_itemsize
                      + sum(int(a.size) * jnp.dtype(a.dtype).itemsize
                            for a in weight_args))

    compiler_kwargs = dict(dimension_semantics=("parallel",))
    if vmem_limit_bytes is not None:
        compiler_kwargs["vmem_limit_bytes"] = vmem_limit_bytes

    out2d = pl.pallas_call(
        kernel,
        out_shape=jax.ShapeDtypeStruct((n, 3 * dim), out_dtype),
        grid_spec=pltpu.PrefetchScalarGridSpec(
            num_scalar_prefetch=0,
            grid=grid,
            in_specs=in_specs,
            out_specs=pl.BlockSpec((tile_n, 3 * dim), lambda i: (i, 0)),
        ),
        compiler_params=pltpu.CompilerParams(**compiler_kwargs),
        cost_estimate=pl.CostEstimate(flops=flops, transcendentals=0,
                                      bytes_accessed=bytes_accessed),
    )(x2d, *weight_args)

    return out2d.reshape(*orig_shape[:-1], 3 * dim)


def _trunc_normal(key, shape, std=0.02, dtype=jnp.float32):
    # mimics nn.init.trunc_normal_(std=0.02)
    return jax.random.truncated_normal(key, -2.0, 2.0, shape, dtype) * std


# --------------------------------------------------------------------------- #
# Demo / correctness check
# --------------------------------------------------------------------------- #
if __name__ == "__main__":
    # Small shapes consistent with the 3D-ViT token tensor the module indexes
    # as qkv[:, :, :, :, :dim]:  x is (B, D1, D2, D3, dim).
    # dim=128 keeps every output slab lane-aligned; N = 2*8*8*8 = 1024 tokens;
    # tile_n=128 gives 8 grid steps (>= 4 per v7x TensorCore).
    B, D1, D2, D3, DIM, R = 2, 8, 8, 8, 128, 8
    TILE_N = 128

    key = jax.random.PRNGKey(0)
    kx, kw, kb, k0, k1, k2, k3 = jax.random.split(key, 7)

    x = jax.random.normal(kx, (B, D1, D2, D3, DIM), jnp.float32)

    # Frozen SAM qkv linear (deterministic synthetic weights), stored (in, out).
    w_qkv = jax.random.normal(kw, (DIM, 3 * DIM), jnp.float32) * 0.02
    b_qkv = jax.random.normal(kb, (3 * DIM,), jnp.float32) * 0.02

    # LoRA weights: reset_parameters() -> trunc_normal std=0.02.
    # PyTorch nn.Linear weight is (out, in); we store the transpose (in, out).
    a_q = _trunc_normal(k0, (DIM, R))   # = linear_a_q.weight.T
    b_q = _trunc_normal(k1, (R, DIM))   # = linear_b_q.weight.T
    a_v = _trunc_normal(k2, (DIM, R))
    b_v = _trunc_normal(k3, (R, DIM))

    # Pure-JAX f32 reference of _LoRA_qkv.forward (HIGHEST precision matmuls).
    hi = jax.lax.Precision.HIGHEST
    qkv_ref = jnp.einsum('...d,de->...e', x, w_qkv, precision=hi) + b_qkv
    dq_ref = jnp.einsum('...r,rd->...d',
                        jnp.einsum('...d,dr->...r', x, a_q, precision=hi),
                        b_q, precision=hi)
    dv_ref = jnp.einsum('...r,rd->...d',
                        jnp.einsum('...d,dr->...r', x, a_v, precision=hi),
                        b_v, precision=hi)
    ref = qkv_ref.at[..., :DIM].add(dq_ref).at[..., -DIM:].add(dv_ref)

    # ---- inference path: LoRA pre-merged into the frozen weight -------------
    params_inf = prepare_lora_qkv_params(w_qkv, b_qkv, a_q, b_q, a_v, b_v,
                                         merge_lora=True)
    out_inf = lora_qkv(x, params_inf, tile_n=TILE_N)
    out_inf = jax.block_until_ready(out_inf)
    assert out_inf.shape == (B, D1, D2, D3, 3 * DIM)
    err_inf = float(jnp.max(jnp.abs(out_inf.astype(jnp.float32) - ref)))
    assert jnp.allclose(out_inf.astype(jnp.float32), ref,
                        atol=2e-2, rtol=2e-2), \
        f"merged-path mismatch vs reference (max abs err {err_inf})"

    # ---- training-style path: explicit LoRA (A/B kept separate) -------------
    params_tr = prepare_lora_qkv_params(w_qkv, b_qkv, a_q, b_q, a_v, b_v,
                                        merge_lora=False)
    out_tr = lora_qkv(x, params_tr, tile_n=TILE_N)
    out_tr = jax.block_until_ready(out_tr)
    assert out_tr.shape == (B, D1, D2, D3, 3 * DIM)
    err_tr = float(jnp.max(jnp.abs(out_tr.astype(jnp.float32) - ref)))
    assert jnp.allclose(out_tr.astype(jnp.float32), ref,
                        atol=2e-2, rtol=2e-2), \
        f"lora-path mismatch vs reference (max abs err {err_tr})"

    # TODO(synk): the rest of LoRA_Sam3D.forward just dispatches to the full
    # sam3D model (image encoder / prompt encoder / mask decoder / prompt
    # module), which is not provided; only the LoRA-modified QKV hot path is
    # implemented here.
    print("KERNEL_OK")
</pallas_src>

<mosaic_0001>
module attributes {stable_mosaic.version = 11 : i64} {
  func.func @_merged_qkv_kernel(%arg0: i32, %arg1: memref<128x128xf32, #tpu.memory_space<vmem>>, %arg2: memref<128x384xbf16, #tpu.memory_space<vmem>>, %arg3: memref<1x384xf32, #tpu.memory_space<vmem>>, %arg4: memref<128x384xbf16, #tpu.memory_space<vmem>>) attributes {dimension_semantics = [#tpu.dimension_semantics<parallel>], iteration_bounds = array<i64: 8>, scalar_prefetch = 0 : i64, scratch_operands = 0 : i64, tpu.core_type = #tpu.core_type<tc>, window_params = [{transform_indices = @transform_0, window_bounds = array<i64: 128, 128>}, {pipeline_mode = #tpu.pipeline_mode<synchronous>, transform_indices = @transform_1, window_bounds = array<i64: 128, 384>}, {pipeline_mode = #tpu.pipeline_mode<synchronous>, transform_indices = @transform_2, window_bounds = array<i64: 1, 384>}, {transform_indices = @transform_3, window_bounds = array<i64: 128, 384>}]} {
    %c0 = arith.constant 0 : index
    %c0_0 = arith.constant 0 : index
    %0 = vector.load %arg1[%c0, %c0_0] : memref<128x128xf32, #tpu.memory_space<vmem>>, vector<128x128xf32>
    %1 = arith.truncf %0 : vector<128x128xf32> to vector<128x128xbf16>
    %c0_1 = arith.constant 0 : index
    %c0_2 = arith.constant 0 : index
    %2 = vector.load %arg2[%c0_1, %c0_2] : memref<128x384xbf16, #tpu.memory_space<vmem>>, vector<128x384xbf16>
    %cst = arith.constant dense<0.000000e+00> : vector<128x384xf32>
    %3 = tpu.matmul %1, %2, %cst {dimension_numbers = #tpu.dot_dimension_numbers<[1], [0], [0], [1], [0, 0, 1, 1], [], []>} : vector<128x128xbf16>, vector<128x384xbf16>, vector<128x384xf32> -> vector<128x384xf32>
    %c0_3 = arith.constant 0 : index
    %c0_4 = arith.constant 0 : index
    %4 = vector.load %arg3[%c0_3, %c0_4] : memref<1x384xf32, #tpu.memory_space<vmem>>, vector<1x384xf32>
    %5 = vector.broadcast %4 : vector<1x384xf32> to vector<128x384xf32>
    %6 = arith.addf %3, %5 : vector<128x384xf32>
    %7 = arith.truncf %6 : vector<128x384xf32> to vector<128x384xbf16>
    %c0_5 = arith.constant 0 : index
    %c0_6 = arith.constant 0 : index
    %8 = vector.load %arg4[%c0_5, %c0_6] : memref<128x384xbf16, #tpu.memory_space<vmem>>, vector<128x384xbf16>
    tpu.vector_store %arg4[%c0_5, %c0_6], %7 {strides = array<i32>} : memref<128x384xbf16, #tpu.memory_space<vmem>>, vector<128x384xbf16>,
    return
  }
  func.func @transform_0(%arg0: i32) -> (i32, i32) {
    %c0_i32 = arith.constant 0 : i32
    %c0_i32_0 = arith.constant 0 : i32
    return %arg0, %c0_i32 : i32, i32
  }
  func.func @transform_1(%arg0: i32) -> (i32, i32) {
    %c0_i32 = arith.constant 0 : i32
    %c0_i32_0 = arith.constant 0 : i32
    %c0_i32_1 = arith.constant 0 : i32
    return %c0_i32, %c0_i32_0 : i32, i32
  }
  func.func @transform_2(%arg0: i32) -> (i32, i32) {
    %c0_i32 = arith.constant 0 : i32
    %c0_i32_0 = arith.constant 0 : i32
    %c0_i32_1 = arith.constant 0 : i32
    return %c0_i32, %c0_i32_0 : i32, i32
  }
  func.func @transform_3(%arg0: i32) -> (i32, i32) {
    %c0_i32 = arith.constant 0 : i32
    %c0_i32_0 = arith.constant 0 : i32
    return %arg0, %c0_i32 : i32, i32
  }
}

</mosaic_0001>

<bundles_post_ra>
// kernel: tpu_custom_call.1
= control target key start
LH: loop header
LB: loop body
LE: loop exit
PB: predicated region body
PF: predicated region fallthrough
CT: control target
= control target key end

     0   :  { %8 = vsyncpa [#allocation3], 0  ;;  %s1458_s0 = inlined_call_operand.hbm [shape: f32[1024,128], index: 0, kind: input, shape index: {}]   ;;  %s1459_s1 = inlined_call_operand.hbm [shape: bf16[128,384], index: 1, kind: input, shape index: {}]   ;;  %s1460_s2 = inlined_call_operand.hbm [shape: f32[1,384], index: 2, kind: input, shape index: {}]   ;;  %s1461_s3 = inlined_call_operand.hbm [shape: bf16[1024,384], index: 3, kind: output, shape index: {}]  }
   0x1   :  { %10 = vsyncpa [#allocation3 + $0x1], 0 }
   0x2   :  { %11 = vsyncpa [#allocation6], 0 }
   0x3   :  { %12 = vsyncpa [#allocation4], 0 }
   0x4   :  { %14 = vsyncpa [#allocation4 + $0x1], 0  ;;  %s1163_s12 = smov 0   ;;  %s1165_s13 = smov 0  }
   0x5   :  { %s1167_s14 = smov 0   ;;  %s1169_s15 = smov 0  }
   0x6 LB: > { %s1184_s16 = sadd.s32 4294967295, %s1133_s15   ;;  %s736_s17 = sadd.s32 4294967294, %s1133_s15   ;;  %s1133_s15 = sphi %s1169_s15, %s1470_s15   ;;  %s1129_s14 = sphi %s1167_s14, %s1469_s14   ;;  %s1125_s13 = sphi %s1165_s13, %s1468_s13   ;;  %s1121_s12 = sphi %s1163_s12, %s1467_s12  }
   0x7   : > { %p40_p0 = scmp.ne.s32.totalorder %s1125_s13, %s1121_s12  ;;  %p41_p1 = scmp.eq.s32.totalorder %s1184_s16, 0 }
   0x8   : > { %p106_p2 = scmp.eq.s32.totalorder %s1184_s16, 7  ;;  %p112_p3 = scmp.eq.s32.totalorder %s736_s17, 7 }
   0x9   : > { %p1193_p4 = por %p41_p1, %p40_p0  ;;  %p737_p5 = scmp.ge.s32.totalorder %s1133_s15, 1 }
   0xa   : > { %p1198_p6 = por %p112_p3, %p40_p0  ;;  %p119_p7 = scmp.lt.s32.totalorder %s1133_s15, 9 }
   0xb   : > { %s130_s22 = sshll.u32 %s1459_s1, 4  ;;  %s1135_s24 = smov [#allocation5]   ;;  %s131_s22 = int_to_ptr.hbm [resolvable:$true] %s130_s22 }
   0xc   : > { %p1206_p8 = pnand %p737_p5, %p119_p7  ;;  %s132_s25 = sshll.u32 %s1135_s24, 4  ;;  %s133_s25 = int_to_ptr.vmem [resolvable:$true] %s132_s25 }
   0xd   : > { %s145_s28 = sshll.u32 %s1460_s2, 4  ;;  %s1136_s29 = smov 192   ;;  %s146_s28 = int_to_ptr.hbm [resolvable:$true] %s145_s28 }
   0xe   : > { %p912_p9 = pneg %p1206_p8  ;;  %s1137_s30 = smov 12  }
   0xf   : > { %s1138_s4 = smov [#allocation7]   ;;  %s1218_s6 = sadd.s32 1, %s1133_s15  }
  0x10   : > { %p913_p10 = pnand %p912_p9, %p41_p1  ;;  %s147_s5 = sshll.u32 %s1138_s4, 4  ;;  %s148_s5 = int_to_ptr.vmem [resolvable:$true] %s147_s5 }
  0x11   : > { %s27_s7 = sadd.s32 1, %s1129_s14  ;;  %s24_s8 = ssub.s32 %s1133_s15, %s1218_s6 }
  0x12   : > { %915 = dma.hbm_to_vmem [thread:$0]  (!%p913_p10), %s131_s22, 3072, %s133_s25, [#allocation6], %s1136_s29, %s1136_s29, %s1137_s30  }
  0x13   : > { %918 = dma.hbm_to_vmem [thread:$0]  (!%p913_p10), %s146_s28, 48, %s148_s5, [#allocation6]  }
  0x14   : > { %p34_p11 = scmp.ne.s32.totalorder %s1129_s14, %s1125_s13  ;;  %p25_p12 = scmp.eq.s32.totalorder %s24_s8, 0 }
  0x15   : > { %p35_p13 = scmp.eq.s32.totalorder %s1133_s15, 0  ;;  %p929_p3 = scmp.lt.s32.totalorder %s1133_s15, 8 }
  0x16   : > { %p1228_p0 = por %p106_p2, %p34_p11  ;;  %s158_s11 = sand.u32 1, %s1129_s14  }
  0x17   : > { %s1234_s10 = scalar_select %p25_p12, %s1129_s14, %s27_s7  }
  0x18   : > { %p36_p5 = por %p35_p13, %p34_p11  ;;  %s741_s17 = sshll.u32 %s158_s11, 7 }
  0x19   : > { %s849_s20 = sshll.u32 %s1133_s15, 7  ;;  %s162_s25 = scalar_lea.vmem [#allocation2], %s741_s17 }
  0x1a   : > { %s167_s24 = scalar_lea.hbm %s1458_s0, %s849_s20  ;;  %s170_s26 = sshll.u32 %s162_s25, 4  ;;  %s171_s26 = int_to_ptr.vmem [resolvable:$true] %s170_s26 }
  0x1b   : > { %s168_s27 = sshll.u32 %s167_s24, 4  ;;  %p1241_p2 = pnand %p929_p3, %p36_p5  ;;  %s169_s27 = int_to_ptr.hbm [resolvable:$true] %s168_s27 }
  0x1c   : > { %s159_s29 = scalar_lea.sflag [#allocation3], %s158_s11  ;;  %s1033_s30 = sshra.s32 %s169_s27, 4  ;;  %s1034_s30 = int_to_ptr.hbm [resolvable:$true] %s1033_s30 }
  0x1d   : > { %s1035_s4 = scalar_lea.hbm %s1034_s30, 128  ;;  %p1037_p9 = pneg %p1241_p2 }
  0x1e   : > { %p1036_p7 = scmp.ne.s32.totalorder %s1034_s30, %s1035_s4  ;;  %s1040_s8 = scalar_lea.hbm %s1458_s0, 1024 }
  0x1f   : > { %p1041_p12 = scmp.lt.s32.totalorder %s1034_s30, %s1458_s0  ;;  %p1042_p13 = scmp.lt.s32.totalorder %s1040_s8, %s1035_s4 }
  0x20   : > { %p1038_p10 = pnand %p1037_p9, %p1036_p7 }
  0x21   : > { %p1043_p3 = por %p1042_p13, %p1041_p12 }
  0x22   : > { %p1039_p11 = pneg %p1038_p10 }
  0x24   : > { %p1044_p5 = pnand %p1043_p3, %p1039_p11 }
  0x26   : > { %1047 = shalt.err (!%p1044_p5)
}
  0x27   : > { %s1139_s11 = smov 128   ;;  %s1140_s21 = smov 8  }
  0x28   : > { %922 = dma.hbm_to_vmem [thread:$0]  (!%p1241_p2), %s169_s27, 2048, %s171_s26, %s159_s29, %s1139_s11, %s1139_s11, %s1140_s21  }
  0x29   : > { %182 = sbr.rel (%p1206_p8) target bundleno = 313 (0x139), region = 32  ;;  %s1258_s22 = sand.u32 (!%p1206_p8), 1, %s1125_s13  }
  0x2a   : > { %s745_s24 = sshll.u32 (!%p1206_p8), %s1258_s22, 7  ;;  %s185_s25 = scalar_lea.sflag (!%p1206_p8), [#allocation3], %s1258_s22 }
  0x2b   : > { %s1262_s30 = scalar_lea.vmem (!%p1206_p8), [#allocation2], %s745_s24 }
  0x2e   : > { %1108 = dma.done.wait (%p1193_p4), %s185_s25, 2048  }
  0x2f   : > { %1110 = vsyncadd (%p1193_p4), %s185_s25, 4294965248 }
  0x30   : > { %1112 = dma.done.wait (%p41_p1), [#allocation6], 3120  }
  0x31   : > { %1114 = vsyncadd (%p41_p1), [#allocation6], 4294964176  ;;  %v834_v0 = vld [vmem:[#allocation5 + $0xa8] sm:$0xf]  ;;  %v872_v1 = vld [vmem:[#allocation5 + $0xb0] sm:$0xf0] }
  0x32   : > { %v871_v2 = vld [vmem:[#allocation5 + $0xac] sm:$0xf]  ;;  %v835_v3 = vor.u32 %v872_v1, %v834_v0  ;;  %v836_v4 = vld [vmem:[#allocation5 + $0xb4] sm:$0xf0]  ;;  %v842_v5 = vld [vmem:[#allocation5 + $0xb0] sm:$0xf] }
  0x33   : > { %v873_v6 = vld [vmem:[#allocation5 + $0xb8] sm:$0xf0]  ;;  %v1272_v7 = vor.u32 %v871_v2, %v836_v4  ;;  %v822_v9 = vld [vmem:[#allocation5 + $0x90] sm:$0xf]  ;;  %v868_v11 = vld [vmem:[#allocation5 + $0x94] sm:$0xf] }
  0x34   : > { %v1274_v8 = vor.u32 %v873_v6, %v842_v5  ;;  %v869_v10 = vld [vmem:[#allocation5 + $0x98] sm:$0xf0]  ;;  %416 = vmatpush.bf16.msra.mxu0 %v835_v3  ;;  %874 = vmatpush.bf16.msra.mxu3 %v835_v3  ;;  %v824_v13 = vld [vmem:[#allocation5 + $0x9c] sm:$0xf0]  ;;  %v830_v14 = vld [vmem:[#allocation5 + $0x98] sm:$0xf] }
  0x35   : > { %v823_v12 = vor.u32 %v869_v10, %v822_v9  ;;  %v870_v15 = vld [vmem:[#allocation5 + $0xa0] sm:$0xf0]  ;;  %465 = vmatpush.bf16.msra.mxu1 %v1272_v7  ;;  %v1278_v16 = vor.u32 %v868_v11, %v824_v13  ;;  %v810_v18 = vld [vmem:[#allocation5 + $0x78] sm:$0xf]  ;;  %v865_v20 = vld [vmem:[#allocation5 + $0x7c] sm:$0xf] }
  0x36   : > { %514 = vmatpush.bf16.msra.mxu2 %v1274_v8  ;;  %v1280_v17 = vor.u32 %v870_v15, %v830_v14  ;;  %v866_v19 = vld [vmem:[#allocation5 + $0x80] sm:$0xf0]  ;;  %v812_v21 = vld [vmem:[#allocation5 + $0x84] sm:$0xf0]  ;;  %v818_v22 = vld [vmem:[#allocation5 + $0x80] sm:$0xf] }
  0x37   : > { %v867_v23 = vld [vmem:[#allocation5 + $0x88] sm:$0xf0]  ;;  %v811_v24 = vor.u32 %v866_v19, %v810_v18  ;;  %v1284_v25 = vor.u32 %v865_v20, %v812_v21  ;;  %v798_v27 = vld [vmem:[#allocation5 + $0x60] sm:$0xf]  ;;  %v862_v29 = vld [vmem:[#allocation5 + $0x64] sm:$0xf] }
  0x38   : > { %417 = vmatpush.bf16.msra.mxu0 %v823_v12  ;;  %875 = vmatpush.bf16.msra.mxu3 %v823_v12  ;;  %v1286_v26 = vor.u32 %v867_v23, %v818_v22  ;;  %v863_v28 = vld [vmem:[#allocation5 + $0x68] sm:$0xf0]  ;;  %v800_v30 = vld [vmem:[#allocation5 + $0x6c] sm:$0xf0]  ;;  %v806_v31 = vld [vmem:[#allocation5 + $0x68] sm:$0xf] }
  0x39   : > { %466 = vmatpush.bf16.msra.mxu1 %v1278_v16  ;;  %v864_v32 = vld [vmem:[#allocation5 + $0x70] sm:$0xf0]  ;;  %v799_v33 = vor.u32 %v863_v28, %v798_v27  ;;  %v1290_v34 = vor.u32 %v862_v29, %v800_v30  ;;  %v786_v36 = vld [vmem:[#allocation5 + $0x48] sm:$0xf]  ;;  %v859_v38 = vld [vmem:[#allocation5 + $0x4c] sm:$0xf] }
  0x3a   : > { %515 = vmatpush.bf16.msra.mxu2 %v1280_v17  ;;  %v1292_v35 = vor.u32 %v864_v32, %v806_v31  ;;  %v860_v37 = vld [vmem:[#allocation5 + $0x50] sm:$0xf0]  ;;  %v788_v39 = vld [vmem:[#allocation5 + $0x54] sm:$0xf0]  ;;  %v794_v40 = vld [vmem:[#allocation5 + $0x50] sm:$0xf] }
  0x3b   : > { %v861_v41 = vld [vmem:[#allocation5 + $0x58] sm:$0xf0]  ;;  %v787_v42 = vor.u32 %v860_v37, %v786_v36  ;;  %v1296_v43 = vor.u32 %v859_v38, %v788_v39  ;;  %v774_v45 = vld [vmem:[#allocation5 + $0x30] sm:$0xf]  ;;  %v856_v47 = vld [vmem:[#allocation5 + $0x34] sm:$0xf] }
  0x3c   : > { %418 = vmatpush.bf16.msra.mxu0 %v811_v24  ;;  %876 = vmatpush.bf16.msra.mxu3 %v811_v24  ;;  %v1298_v44 = vor.u32 %v861_v41, %v794_v40  ;;  %v857_v46 = vld [vmem:[#allocation5 + $0x38] sm:$0xf0]  ;;  %v776_v48 = vld [vmem:[#allocation5 + $0x3c] sm:$0xf0]  ;;  %v782_v49 = vld [vmem:[#allocation5 + $0x38] sm:$0xf] }
  0x3d   : > { %467 = vmatpush.bf16.msra.mxu1 %v1284_v25  ;;  %v858_v50 = vld [vmem:[#allocation5 + $0x40] sm:$0xf0]  ;;  %v775_v51 = vor.u32 %v857_v46, %v774_v45  ;;  %v779_v52 = vor.u32 %v856_v47, %v776_v48  ;;  %v762_v54 = vld [vmem:[#allocation5 + $0x18] sm:$0xf]  ;;  %v853_v56 = vld [vmem:[#allocation5 + $0x1c] sm:$0xf] }
  0x3e   : > { %516 = vmatpush.bf16.msra.mxu2 %v1286_v26  ;;  %v1302_v53 = vor.u32 %v858_v50, %v782_v49  ;;  %v854_v55 = vld [vmem:[#allocation5 + $0x20] sm:$0xf0]  ;;  %v764_v57 = vld [vmem:[#allocation5 + $0x24] sm:$0xf0]  ;;  %v770_v58 = vld [vmem:[#allocation5 + $0x20] sm:$0xf] }
  0x3f   : > { %v855_v59 = vld [vmem:[#allocation5 + $0x28] sm:$0xf0]  ;;  %v763_v60 = vor.u32 %v854_v55, %v762_v54  ;;  %v767_v61 = vor.u32 %v853_v56, %v764_v57  ;;  %v750_v63 = vld [vmem:[#allocation5] sm:$0xf]  ;;  %v850_v1 = vld [vmem:[#allocation5 + $0x4] sm:$0xf] }
  0x40   : > { %419 = vmatpush.bf16.msra.mxu0 %v799_v33  ;;  %877 = vmatpush.bf16.msra.mxu3 %v799_v33  ;;  %v1305_v62 = vor.u32 %v855_v59, %v770_v58  ;;  %v851_v0 = vld [vmem:[#allocation5 + $0x8] sm:$0xf0]  ;;  %v752_v2 = vld [vmem:[#allocation5 + $0xc] sm:$0xf0]  ;;  %v758_v3 = vld [vmem:[#allocation5 + $0x8] sm:$0xf] }
  0x41   : > { %468 = vmatpush.bf16.msra.mxu1 %v1290_v34  ;;  %v852_v4 = vld [vmem:[#allocation5 + $0x10] sm:$0xf0]  ;;  %v224_v5 = vld [vmem:[%s1262_s30] sm:$0xff]  ;;  %v751_v6 = vor.u32 %v851_v0, %v750_v63  ;;  %v225_v9 = vld [vmem:[%s1262_s30 + $0x8] sm:$0xff]  ;;  %v755_v12 = vor.u32 %v850_v1, %v752_v2  ;;  %s898_s18 = smul.u32 192, %s1258_s22  ;;  %s628_s5 = scalar_lea.sflag [#allocation4], %s1258_s22 }
  0x42   : > { %517 = vmatpush.bf16.msra.mxu2 %v1292_v35  ;;  %v236_v10 = vld [vmem:[%s1262_s30 + $0x60] sm:$0xff]  ;;  %v237_v11 = vld [vmem:[%s1262_s30 + $0x68] sm:$0xff]  ;;  %v759_v13 = vor.u32 %v852_v4, %v758_v3  ;;  %v240_v14 = vpack.c.bf16 %v225_v9, %v224_v5  ;;  %v226_v18 = vld [vmem:[%s1262_s30 + $0x10] sm:$0xff]  ;;  %s899_s26 = smul.u32 192, %s1184_s16  ;;  %s1083_s11 = scalar_lea.hbm %s1461_s3, 1536 }
  0x43   : > { %v246_v15 = vpack.c.bf16 %v237_v11, %v236_v10  ;;  %v227_v19 = vld [vmem:[%s1262_s30 + $0x18] sm:$0xff]  ;;  %v238_v20 = vld [vmem:[%s1262_s30 + $0x70] sm:$0xff]  ;;  %v280_v32 = vld [vmem:[#allocation7] sm:$0x7]  ;;  %s1345_s23 = scalar_lea.vmem [#allocation8], %s898_s18 }
  0x44   : > { %420 = vmatpush.bf16.msra.mxu0 %v787_v42  ;;  %878 = vmatpush.bf16.msra.mxu3 %v787_v42  ;;  %v239_v21 = vld [vmem:[%s1262_s30 + $0x78] sm:$0xff]  ;;  %v241_v22 = vpack.c.bf16 %v227_v19, %v226_v18  ;;  %v234_v29 = vld [vmem:[%s1262_s30 + $0x50] sm:$0xff]  ;;  %v1336_v33 = vperm.slane %v280_v32, 0  ;;  %v1343_v40 = vperm.slane %v280_v32, 2  ;;  %s640_s29 = scalar_lea.hbm %s1461_s3, %s899_s26  ;;  %s641_s16 = sshll.u32 %s1345_s23, 4  ;;  %s642_s16 = int_to_ptr.vmem [resolvable:$true] %s641_s16 }
  0x45   : > { %469 = vmatpush.bf16.msra.mxu1 %v1296_v43  ;;  %v247_v23 = vpack.c.bf16 %v239_v21, %v238_v20  ;;  %v231_v27 = vld [vmem:[%s1262_s30 + $0x38] sm:$0xff]  ;;  %s643_s4 = sshll.u32 %s640_s29, 4  ;;  %s644_s4 = int_to_ptr.hbm [resolvable:$true] %s643_s4 }
  0x46   : > { %518 = vmatpush.bf16.msra.mxu2 %v1298_v44  ;;  %v235_v30 = vld [vmem:[%s1262_s30 + $0x58] sm:$0xff]  ;;  %s1077_s7 = sshra.s32 %s644_s4, 4  ;;  %s1078_s7 = int_to_ptr.hbm [resolvable:$true] %s1077_s7 }
  0x47   : > { %v245_v31 = vpack.c.bf16 %v235_v30, %v234_v29  ;;  %s1079_s8 = scalar_lea.hbm %s1078_s7, 192  ;;  %p1084_p2 = scmp.lt.s32.totalorder %s1078_s7, %s1461_s3 }
  0x48   : > { %421 = vmatpush.bf16.msra.mxu0 %v775_v51  ;;  %879 = vmatpush.bf16.msra.mxu3 %v775_v51  ;;  %p1080_p1 = scmp.ne.s32.totalorder %s1078_s7, %s1079_s8  ;;  %p1085_p7 = scmp.lt.s32.totalorder %s1083_s11, %s1079_s8 }
  0x49   : > { %470 = vmatpush.bf16.msra.mxu1 %v779_v52 }
  0x4a   : > { %519 = vmatpush.bf16.msra.mxu2 %v1302_v53  ;;  %p1081_p4 = pnand %p1080_p1, %p1228_p0  ;;  %p1086_p9 = por %p1085_p7, %p1084_p2 }
  0x4c   : > { %422 = vmatpush.bf16.msra.mxu0 %v763_v60  ;;  %880 = vmatpush.bf16.msra.mxu3 %v763_v60  ;;  %p1082_p8 = pneg %p1081_p4 }
  0x4d   : > { %471 = vmatpush.bf16.msra.mxu1 %v767_v61 }
  0x4e   : > { %520 = vmatpush.bf16.msra.mxu2 %v1305_v62  ;;  %p1087_p10 = pnand %p1086_p9, %p1082_p8 }
  0x50   : > { %423 = vmatpush.bf16.msra.mxu0 %v751_v6  ;;  %881 = vmatpush.bf16.msra.mxu3 %v751_v6 }
  0x51   : > { %472 = vmatpush.bf16.msra.mxu1 %v755_v12 }
  0x52   : > { %521 = vmatpush.bf16.msra.mxu2 %v759_v13 }
  0x53   : > { %424 = vmatmul.bf16.vlgmr.msra.gmra.mxu0 %v240_v14  ;;  %454 = vmatmul.bf16.vlgmr.msra.gmra.mxu3 %v246_v15 }
  0x54   : > { %882 = vmatpush.bf16.msrb.mxu3 %v1272_v7  ;;  %473 = vmatmul.bf16.vlgmr.msra.gmra.mxu1 %v240_v14  ;;  %v228_v7 = vld [vmem:[%s1262_s30 + $0x20] sm:$0xff] }
  0x55   : > { %522 = vmatmul.bf16.vlgmr.msra.gmra.mxu2 %v240_v14 }
  0x58   : > { %883 = vmatpush.bf16.msrb.mxu3 %v1278_v16  ;;  %v229_v16 = vld [vmem:[%s1262_s30 + $0x28] sm:$0xff] }
  0x59   : > { %v242_v24 = vpack.c.bf16 %v229_v16, %v228_v7 }
  0x5c   : > { %884 = vmatpush.bf16.msrb.mxu3 %v1284_v25  ;;  %v230_v25 = vld [vmem:[%s1262_s30 + $0x30] sm:$0xff] }
  0x5d   : > { %v243_v28 = vpack.c.bf16 %v231_v27, %v230_v25 }
  0x60   : > { %885 = vmatpush.bf16.msrb.mxu3 %v1290_v34  ;;  %v1338_v34 = vperm.slane %v280_v32, 1 }
  0x63   : > { %429 = vmatmul.bf16.gmra.mxu0 %v241_v22  ;;  %459 = vmatmul.bf16.gmra.mxu3 %v247_v23 }
  0x64   : > { %886 = vmatpush.bf16.msrb.mxu3 %v1296_v43  ;;  %478 = vmatmul.bf16.gmra.mxu1 %v241_v22 }
  0x65   : > { %527 = vmatmul.bf16.gmra.mxu2 %v241_v22 }
  0x68   : > { %887 = vmatpush.bf16.msrb.mxu3 %v779_v52 }
  0x6c   : > { %888 = vmatpush.bf16.msrb.mxu3 %v767_v61 }
  0x70   : > { %889 = vmatpush.bf16.msrb.mxu3 %v755_v12 }
  0x73   : > { %434 = vmatmul.bf16.gmra.mxu0 %v242_v24  ;;  %503 = vmatmul.bf16.vlgmr.msrb.gmra.mxu3 %v246_v15 }
  0x74   : > { %890 = vmatpush.bf16.msra.mxu3 %v1274_v8  ;;  %483 = vmatmul.bf16.gmra.mxu1 %v242_v24  ;;  %v232_v8 = vld [vmem:[%s1262_s30 + $0x40] sm:$0xff] }
  0x75   : > { %532 = vmatmul.bf16.gmra.mxu2 %v242_v24 }
  0x78   : > { %891 = vmatpush.bf16.msra.mxu3 %v1280_v17  ;;  %v233_v17 = vld [vmem:[%s1262_s30 + $0x48] sm:$0xff] }
  0x7c   : > { %892 = vmatpush.bf16.msra.mxu3 %v1286_v26  ;;  %v244_v26 = vpack.c.bf16 %v233_v17, %v232_v8 }
  0x80   : > { %893 = vmatpush.bf16.msra.mxu3 %v1292_v35 }
  0x83   : > { %439 = vmatmul.bf16.gmra.mxu0 %v243_v28  ;;  %508 = vmatmul.bf16.gmra.mxu3 %v247_v23 }
  0x84   : > { %894 = vmatpush.bf16.msra.mxu3 %v1298_v44  ;;  %488 = vmatmul.bf16.gmra.mxu1 %v243_v28 }
  0x85   : > { %537 = vmatmul.bf16.gmra.mxu2 %v243_v28 }
  0x88   : > { %895 = vmatpush.bf16.msra.mxu3 %v1302_v53 }
  0x8c   : > { %896 = vmatpush.bf16.msra.mxu3 %v1305_v62 }
  0x90   : > { %897 = vmatpush.bf16.msra.mxu3 %v759_v13 }
  0x93   : > { %444 = vmatmul.bf16.gmra.mxu0 %v244_v26  ;;  %552 = vmatmul.bf16.vlgmr.msra.gmra.mxu3 %v246_v15 }
  0x94   : > { %493 = vmatmul.bf16.gmra.mxu1 %v244_v26 }
  0x95   : > { %542 = vmatmul.bf16.gmra.mxu2 %v244_v26 }
  0xa3   : > { %449 = vmatmul.bf16.gmra.mxu0 %v245_v31  ;;  %557 = vmatmul.bf16.gmra.mxu3 %v247_v23 }
  0xa4   : > { %498 = vmatmul.bf16.gmra.mxu1 %v245_v31 }
  0xa5   : > { %547 = vmatmul.bf16.gmra.mxu2 %v245_v31 }
  0xd0   : > { %v425_v35 = vpop.f32.mrf.mxu0 }
  0xd1   : > { %v426_v36 = vadd.f32 %v425_v35, %v1336_v33  ;;  %v474_v37 = vpop.f32.mrf.mxu1 }
  0xd2   : > { %v475_v38 = vadd.f32 %v474_v37, %v1338_v34 }
  0xd4   : > { %v563_v39 = vpack.c.bf16 %v475_v38, %v426_v36 }
  0xd6   : > { %595 = vst [vmem:[%s1345_s23] sm:$0xff] %v563_v39  ;;  %v455_v41 = vpop.f32.mrf.mxu3 }
  0xd7   : > { %v456_v18 = vadd.f32 %v455_v41, %v1336_v33 }
  0xd8   : > { %v523_v42 = vpop.f32.mrf.mxu2  ;;  %v427_v44 = vpop.f32.mrf.mxu0 }
  0xd9   : > { %v524_v43 = vadd.f32 %v523_v42, %v1343_v40  ;;  %v428_v45 = vadd.f32 %v427_v44, %v1336_v33  ;;  %v476_v46 = vpop.f32.mrf.mxu1 }
  0xda   : > { %v477_v48 = vadd.f32 %v476_v46, %v1338_v34 }
  0xdb   : > { %v564_v47 = vpack.c.bf16 %v524_v43, %v524_v43 }
  0xdc   : > { %v565_v49 = vpack.c.bf16 %v477_v48, %v428_v45 }
  0xdd   : > { %596 = vst [vmem:[%s1345_s23 + $0x8] sm:$0xf] %v564_v47 }
  0xde   : > { %597 = vst [vmem:[%s1345_s23 + $0xc] sm:$0xff] %v565_v49  ;;  %v457_v50 = vpop.f32.mrf.mxu3 }
  0xdf   : > { %v458_v8 = vadd.f32 %v457_v50, %v1336_v33 }
  0xe0   : > { %v525_v51 = vpop.f32.mrf.mxu2  ;;  %v430_v53 = vpop.f32.mrf.mxu0 }
  0xe1   : > { %v526_v52 = vadd.f32 %v525_v51, %v1343_v40  ;;  %v431_v54 = vadd.f32 %v430_v53, %v1336_v33  ;;  %v479_v55 = vpop.f32.mrf.mxu1 }
  0xe2   : > { %v480_v57 = vadd.f32 %v479_v55, %v1338_v34 }
  0xe3   : > { %v566_v56 = vpack.c.bf16 %v526_v52, %v526_v52 }
  0xe4   : > { %v567_v58 = vpack.c.bf16 %v480_v57, %v431_v54 }
  0xe5   : > { %598 = vst [vmem:[%s1345_s23 + $0x14] sm:$0xf] %v566_v56 }
  0xe6   : > { %599 = vst [vmem:[%s1345_s23 + $0x18] sm:$0xff] %v567_v58  ;;  %v460_v59 = vpop.f32.mrf.mxu3 }
  0xe7   : > { %v461_v41 = vadd.f32 %v460_v59, %v1336_v33 }
  0xe8   : > { %v528_v60 = vpop.f32.mrf.mxu2  ;;  %v432_v62 = vpop.f32.mrf.mxu0 }
  0xe9   : > { %v529_v61 = vadd.f32 %v528_v60, %v1343_v40  ;;  %v433_v63 = vadd.f32 %v432_v62, %v1336_v33  ;;  %v481_v0 = vpop.f32.mrf.mxu1 }
  0xea   : > { %v482_v2 = vadd.f32 %v481_v0, %v1338_v34 }
  0xeb   : > { %v568_v1 = vpack.c.bf16 %v529_v61, %v529_v61 }
  0xec   : > { %v569_v3 = vpack.c.bf16 %v482_v2, %v433_v63 }
  0xed   : > { %600 = vst [vmem:[%s1345_s23 + $0x20] sm:$0xf] %v568_v1 }
  0xee   : > { %601 = vst [vmem:[%s1345_s23 + $0x24] sm:$0xff] %v569_v3  ;;  %v462_v4 = vpop.f32.mrf.mxu3 }
  0xef   : > { %v463_v53 = vadd.f32 %v462_v4, %v1336_v33 }
  0xf0   : > { %v530_v5 = vpop.f32.mrf.mxu2  ;;  %v435_v9 = vpop.f32.mrf.mxu0 }
  0xf1   : > { %v531_v6 = vadd.f32 %v530_v5, %v1343_v40  ;;  %v436_v10 = vadd.f32 %v435_v9, %v1336_v33  ;;  %v484_v11 = vpop.f32.mrf.mxu1 }
  0xf2   : > { %v485_v13 = vadd.f32 %v484_v11, %v1338_v34 }
  0xf3   : > { %v570_v12 = vpack.c.bf16 %v531_v6, %v531_v6 }
  0xf4   : > { %v571_v14 = vpack.c.bf16 %v485_v13, %v436_v10 }
  0xf5   : > { %602 = vst [vmem:[%s1345_s23 + $0x2c] sm:$0xf] %v570_v12 }
  0xf6   : > { %603 = vst [vmem:[%s1345_s23 + $0x30] sm:$0xff] %v571_v14  ;;  %v504_v15 = vpop.f32.mrf.mxu3 }
  0xf7   : > { %v505_v19 = vadd.f32 %v504_v15, %v1338_v34 }
  0xf8   : > { %v533_v20 = vpop.f32.mrf.mxu2  ;;  %v437_v22 = vpop.f32.mrf.mxu0 }
  0xf9   : > { %v534_v21 = vadd.f32 %v533_v20, %v1343_v40  ;;  %v587_v23 = vpack.c.bf16 %v505_v19, %v456_v18  ;;  %v438_v7 = vadd.f32 %v437_v22, %v1336_v33  ;;  %v486_v16 = vpop.f32.mrf.mxu1 }
  0xfa   : > { %v487_v25 = vadd.f32 %v486_v16, %v1338_v34 }
  0xfb   : > { %v572_v24 = vpack.c.bf16 %v534_v21, %v534_v21  ;;  %619 = vst [vmem:[%s1345_s23 + $0x90] sm:$0xff] %v587_v23 }
  0xfc   : > { %v573_v27 = vpack.c.bf16 %v487_v25, %v438_v7 }
  0xfd   : > { %604 = vst [vmem:[%s1345_s23 + $0x38] sm:$0xf] %v572_v24 }
  0xfe   : > { %605 = vst [vmem:[%s1345_s23 + $0x3c] sm:$0xff] %v573_v27  ;;  %v506_v28 = vpop.f32.mrf.mxu3 }
  0xff   : > { %v507_v17 = vadd.f32 %v506_v28, %v1338_v34 }
 0x100   : > { %v535_v26 = vpop.f32.mrf.mxu2  ;;  %v440_v30 = vpop.f32.mrf.mxu0 }
 0x101   : > { %v536_v29 = vadd.f32 %v535_v26, %v1343_v40  ;;  %v589_v31 = vpack.c.bf16 %v507_v17, %v458_v8  ;;  %v441_v32 = vadd.f32 %v440_v30, %v1336_v33  ;;  %v489_v35 = vpop.f32.mrf.mxu1 }
 0x102   : > { %v490_v37 = vadd.f32 %v489_v35, %v1338_v34 }
 0x103   : > { %v574_v36 = vpack.c.bf16 %v536_v29, %v536_v29  ;;  %621 = vst [vmem:[%s1345_s23 + $0x9c] sm:$0xff] %v589_v31 }
 0x104   : > { %v575_v38 = vpack.c.bf16 %v490_v37, %v441_v32 }
 0x105   : > { %606 = vst [vmem:[%s1345_s23 + $0x44] sm:$0xf] %v574_v36 }
 0x106   : > { %607 = vst [vmem:[%s1345_s23 + $0x48] sm:$0xff] %v575_v38  ;;  %v509_v39 = vpop.f32.mrf.mxu3 }
 0x107   : > { %v510_v42 = vadd.f32 %v509_v39, %v1338_v34 }
 0x108   : > { %v538_v43 = vpop.f32.mrf.mxu2  ;;  %v442_v45 = vpop.f32.mrf.mxu0 }
 0x109   : > { %v539_v44 = vadd.f32 %v538_v43, %v1343_v40  ;;  %v591_v46 = vpack.c.bf16 %v510_v42, %v461_v41  ;;  %v443_v47 = vadd.f32 %v442_v45, %v1336_v33  ;;  %v491_v48 = vpop.f32.mrf.mxu1 }
 0x10a   : > { %v492_v50 = vadd.f32 %v491_v48, %v1338_v34 }
 0x10b   : > { %v576_v49 = vpack.c.bf16 %v539_v44, %v539_v44  ;;  %623 = vst [vmem:[%s1345_s23 + $0xa8] sm:$0xff] %v591_v46 }
 0x10c   : > { %v577_v51 = vpack.c.bf16 %v492_v50, %v443_v47 }
 0x10d   : > { %608 = vst [vmem:[%s1345_s23 + $0x50] sm:$0xf] %v576_v49 }
 0x10e   : > { %609 = vst [vmem:[%s1345_s23 + $0x54] sm:$0xff] %v577_v51  ;;  %v511_v52 = vpop.f32.mrf.mxu3 }
 0x10f   : > { %v512_v54 = vadd.f32 %v511_v52, %v1338_v34 }
 0x110   : > { %v540_v55 = vpop.f32.mrf.mxu2  ;;  %v445_v57 = vpop.f32.mrf.mxu0 }
 0x111   : > { %v541_v56 = vadd.f32 %v540_v55, %v1343_v40  ;;  %v593_v58 = vpack.c.bf16 %v512_v54, %v463_v53  ;;  %v446_v59 = vadd.f32 %v445_v57, %v1336_v33  ;;  %v494_v60 = vpop.f32.mrf.mxu1 }
 0x112   : > { %v495_v62 = vadd.f32 %v494_v60, %v1338_v34 }
 0x113   : > { %v578_v61 = vpack.c.bf16 %v541_v56, %v541_v56  ;;  %625 = vst [vmem:[%s1345_s23 + $0xb4] sm:$0xff] %v593_v58 }
 0x114   : > { %v579_v63 = vpack.c.bf16 %v495_v62, %v446_v59 }
 0x115   : > { %610 = vst [vmem:[%s1345_s23 + $0x5c] sm:$0xf] %v578_v61 }
 0x116   : > { %611 = vst [vmem:[%s1345_s23 + $0x60] sm:$0xff] %v579_v63  ;;  %v553_v0 = vpop.f32.mrf.mxu3 }
 0x117   : > { %v554_v2 = vadd.f32 %v553_v0, %v1343_v40 }
 0x118   : > { %v543_v1 = vpop.f32.mrf.mxu2  ;;  %v447_v4 = vpop.f32.mrf.mxu0 }
 0x119   : > { %v544_v3 = vadd.f32 %v543_v1, %v1343_v40  ;;  %v588_v5 = vpack.c.bf16 %v554_v2, %v554_v2  ;;  %v448_v6 = vadd.f32 %v447_v4, %v1336_v33  ;;  %v496_v9 = vpop.f32.mrf.mxu1 }
 0x11a   : > { %v497_v11 = vadd.f32 %v496_v9, %v1338_v34 }
 0x11b   : > { %v580_v10 = vpack.c.bf16 %v544_v3, %v544_v3  ;;  %620 = vst [vmem:[%s1345_s23 + $0x98] sm:$0xf] %v588_v5 }
 0x11c   : > { %v581_v12 = vpack.c.bf16 %v497_v11, %v448_v6 }
 0x11d   : > { %612 = vst [vmem:[%s1345_s23 + $0x68] sm:$0xf] %v580_v10 }
 0x11e   : > { %613 = vst [vmem:[%s1345_s23 + $0x6c] sm:$0xff] %v581_v12  ;;  %v555_v13 = vpop.f32.mrf.mxu3 }
 0x11f   : > { %v556_v15 = vadd.f32 %v555_v13, %v1343_v40 }
 0x120   : > { %v545_v14 = vpop.f32.mrf.mxu2  ;;  %v450_v19 = vpop.f32.mrf.mxu0 }
 0x121   : > { %v546_v18 = vadd.f32 %v545_v14, %v1343_v40  ;;  %v590_v20 = vpack.c.bf16 %v556_v15, %v556_v15  ;;  %v451_v21 = vadd.f32 %v450_v19, %v1336_v33  ;;  %v499_v22 = vpop.f32.mrf.mxu1 }
 0x122   : > { %v500_v7 = vadd.f32 %v499_v22, %v1338_v34 }
 0x123   : > { %v582_v23 = vpack.c.bf16 %v546_v18, %v546_v18  ;;  %622 = vst [vmem:[%s1345_s23 + $0xa4] sm:$0xf] %v590_v20 }
 0x124   : > { %v583_v16 = vpack.c.bf16 %v500_v7, %v451_v21 }
 0x125   : > { %614 = vst [vmem:[%s1345_s23 + $0x74] sm:$0xf] %v582_v23 }
 0x126   : > { %615 = vst [vmem:[%s1345_s23 + $0x78] sm:$0xff] %v583_v16  ;;  %v558_v24 = vpop.f32.mrf.mxu3 }
 0x127   : > { %v559_v27 = vadd.f32 %v558_v24, %v1343_v40 }
 0x128   : > { %v548_v25 = vpop.f32.mrf.mxu2  ;;  %v452_v8 = vpop.f32.mrf.mxu0 }
 0x129   : > { %v549_v28 = vadd.f32 %v548_v25, %v1343_v40  ;;  %v592_v17 = vpack.c.bf16 %v559_v27, %v559_v27  ;;  %v453_v26 = vadd.f32 %v452_v8, %v1336_v33  ;;  %v501_v29 = vpop.f32.mrf.mxu1 }
 0x12a   : > { %v502_v31 = vadd.f32 %v501_v29, %v1338_v34 }
 0x12b   : > { %v584_v30 = vpack.c.bf16 %v549_v28, %v549_v28  ;;  %624 = vst [vmem:[%s1345_s23 + $0xb0] sm:$0xf] %v592_v17 }
 0x12c   : > { %v585_v32 = vpack.c.bf16 %v502_v31, %v453_v26 }
 0x12d   : > { %616 = vst [vmem:[%s1345_s23 + $0x80] sm:$0xf] %v584_v30 }
 0x12e   : > { %617 = vst [vmem:[%s1345_s23 + $0x84] sm:$0xff] %v585_v32  ;;  %v560_v35 = vpop.f32.mrf.mxu3 }
 0x12f   : > { %v561_v36 = vadd.f32 %v560_v35, %v1343_v40 }
 0x130   : > { %v550_v33 = vpop.f32.mrf.mxu2 }
 0x131   : > { %v551_v34 = vadd.f32 %v550_v33, %v1343_v40  ;;  %v594_v37 = vpack.c.bf16 %v561_v36, %v561_v36 }
 0x133   : > { %v586_v38 = vpack.c.bf16 %v551_v34, %v551_v34  ;;  %626 = vst [vmem:[%s1345_s23 + $0xbc] sm:$0xf] %v594_v37 }
 0x135   : > { %618 = vst [vmem:[%s1345_s23 + $0x8c] sm:$0xf] %v586_v38 }
 0x136   : > { %1090 = shalt.err (!%p1087_p10)
}
 0x137   : > { %s1141_s22 = smov 192   ;;  %s1142_s25 = smov 12  }
 0x138   : > { %910 = dma.vmem_to_hbm [thread:$0]  (%p1228_p0), %s642_s16, 3072, %s644_s4, %s628_s5, %s1141_s22, %s1141_s22, %s1142_s25  }
 0x139 PF: > { %p932_p11 = scmp.ge.s32.totalorder %s1133_s15, 2  ;;  %s658_s30 = sand.u32 1, %s1121_s12  }
 0x13a   : > { %s659_s18 = scalar_lea.sflag [#allocation4], %s658_s30 }
 0x13b   : > { %p924_p12 = pnand %p932_p11, %p1198_p6 }
 0x13d   : > { %p925_p13 = pneg %p924_p12 }
 0x13f   : > { %1116 = dma.done.wait (%p925_p13), %s659_s18, 3072  }
 0x140   : > { %1118 = vsyncadd (%p925_p13), %s659_s18, 4294964224  ;;  %p17_p3 = scmp.ge.s32.totalorder %s1218_s6, 10   ;;  %s1467_s12 = smov %s1125_s13 }
 0x141   : > { %s1468_s13 = smov %s1129_s14  ;;  %s1469_s14 = smov %s1234_s10 }
 0x142   : > { %s1470_s15 = smov %s1218_s6  ;;  %19 = sbr.rel (!%p17_p3) target bundleno = 6 (0x6), region = 85 }
 0x147   :  { %665 = vsyncpa [#allocation3], 1 }
 0x148   :  { %667 = vsyncpa [#allocation3 + $0x1], 1 }
 0x149   :  { %668 = vsyncpa [#allocation6], 1 }
 0x14a   :  { %669 = vsyncpa [#allocation4], 1 }
 0x14b   :  { %671 = vsyncpa [#allocation4 + $0x1], 1 }

</bundles_post_ra>
